<compile_context>
chip_gen: v7x
topology: tpu7x:2x2x1
jax: 0.10.0
libtpu: 0.0.40
codegen_flags: <defaults>
</compile_context>

<pallas_src>
import jax
import jax.numpy as jnp
from jax.experimental import pallas as pl
from jax.experimental.pallas import tpu as pltpu


def _linreg_sigmoid_kernel(x_ref, w_ref, b_ref, o_ref):
    # x_ref: (TILE_B, D) VMEM tile, caller dtype (auto double-buffered)
    # w_ref: (D, 1)      VMEM, resident (constant index_map, never re-DMA'd)
    # b_ref: (1, 1)      SMEM f32 scalar
    # o_ref: (TILE_B, 1) VMEM output block
    z = jnp.dot(x_ref[...], w_ref[...], preferred_element_type=jnp.float32)
    z = z + b_ref[0, 0]                               # scalar bias from SMEM
    o_ref[...] = jax.nn.sigmoid(z).astype(o_ref.dtype)


def _round_up(n: int, m: int) -> int:
    return ((n + m - 1) // m) * m


def _vmem_plan():
    """Returns (x double-buffer byte budget, vmem_limit_bytes) for this chip."""
    try:
        cap = int(getattr(pltpu.get_tpu_info(), "vmem_capacity_bytes",
                          64 * 1024 * 1024))
    except Exception:  # no hardware query available -> conservative plan
        cap = 64 * 1024 * 1024
    if cap <= 64 * 1024 * 1024:
        # v7x-class: 64 MiB per TensorCore.  ~18 MiB tiles double-buffered,
        # leaving headroom for w, the output block and Mosaic scratch.
        return 36 * 1024 * 1024, 48 * 1024 * 1024
    # v5e / v6e: 128 MiB physical; raise the scoped limit explicitly so the
    # 16/32 MiB default never forces smaller blocks.
    return 32 * 1024 * 1024, 64 * 1024 * 1024


def liner_regress_forward(x, w, b, *, tile_b=None):
    """Pallas forward pass of LinerRegress: sigmoid(x @ w.T + b).

    x: (B, D)  float32 or bfloat16 (dtype preserved end-to-end)
    w: (1, D)  PyTorch nn.Linear weight layout
    b: (1,) or scalar
    returns: (B, 1) in x.dtype
    """
    x = jnp.asarray(x)
    if x.dtype not in (jnp.float32, jnp.bfloat16):
        x = x.astype(jnp.float32)
    B, D = x.shape
    itemsize = jnp.dtype(x.dtype).itemsize

    w_col = jnp.asarray(w).astype(x.dtype).reshape(D, 1)   # (1,D) -> (D,1)
    b_sc = jnp.asarray(b, jnp.float32).reshape(1, 1)

    x_budget, vmem_limit = _vmem_plan()
    if tile_b is None:
        # Biggest batch tile whose double-buffered x footprint fits the budget.
        lane_d = max(_round_up(D, 128), 128)               # VMEM lane padding
        tile_b = x_budget // (2 * lane_d * itemsize)
    tile_b = int(tile_b)

    if B >= 128:
        tile_b = max(128, (tile_b // 128) * 128)           # full-lane alignment
        tile_b = min(tile_b, _round_up(B, 128))            # don't exceed batch
    else:
        tile_b = _round_up(max(B, 1), 8)                   # one small tile

    num_tiles = pl.cdiv(B, tile_b)                          # boundary tile OK

    out = pl.pallas_call(
        _linreg_sigmoid_kernel,
        out_shape=jax.ShapeDtypeStruct((B, 1), x.dtype),
        grid_spec=pltpu.PrefetchScalarGridSpec(
            num_scalar_prefetch=0,
            grid=(num_tiles,),
            in_specs=[
                pl.BlockSpec((tile_b, D), lambda i: (i, 0)),          # x tile
                pl.BlockSpec((D, 1), lambda i: (0, 0)),               # w resident
                pl.BlockSpec(memory_space=pltpu.MemorySpace.SMEM),    # bias
            ],
            out_specs=pl.BlockSpec((tile_b, 1), lambda i: (i, 0)),
        ),
        compiler_params=pltpu.CompilerParams(
            dimension_semantics=("parallel",),   # shard batch tiles across TCs
            vmem_limit_bytes=vmem_limit,
        ),
        cost_estimate=pl.CostEstimate(
            flops=2 * B * D,
            transcendentals=B,
            bytes_accessed=itemsize * (B * D + D + B) + 4,
        ),
    )(x, w_col, b_sc)

    return out


if __name__ == "__main__":
    key = jax.random.PRNGKey(0)
    kx, kw, kb, kx2 = jax.random.split(key, 4)

    batch, x_dim = 8, 32

    x = jax.random.normal(kx, (batch, x_dim), dtype=jnp.float32)
    # nn.Linear-style init: weight (1, x_dim), bias (1,)
    bound = 1.0 / jnp.sqrt(jnp.float32(x_dim))
    w_pt = jax.random.uniform(kw, (1, x_dim), minval=-bound, maxval=bound,
                              dtype=jnp.float32)
    b_pt = jax.random.uniform(kb, (1,), minval=-bound, maxval=bound,
                              dtype=jnp.float32)

    # Small batch (single tile).
    out = jax.block_until_ready(liner_regress_forward(x, w_pt, b_pt))
    ref = jax.nn.sigmoid(x @ w_pt.T + b_pt)
    assert out.shape == (batch, 1)
    assert jnp.allclose(out, ref, atol=1e-5), "mismatch vs reference (small batch)"

    # Ragged batch, multiple tiles, no wrapper-side padding (boundary block).
    batch2 = 300
    x2 = jax.random.normal(kx2, (batch2, x_dim), dtype=jnp.float32)
    out2 = jax.block_until_ready(
        liner_regress_forward(x2, w_pt, b_pt, tile_b=128))
    ref2 = jax.nn.sigmoid(x2 @ w_pt.T + b_pt)
    assert out2.shape == (batch2, 1)
    assert jnp.allclose(out2, ref2, atol=1e-5), "mismatch vs reference (ragged batch)"

    # bf16 inputs stay bf16 on the HBM side (dtype-preserving path).
    x_bf = x2.astype(jnp.bfloat16)
    w_bf = w_pt.astype(jnp.bfloat16)
    out3 = jax.block_until_ready(
        liner_regress_forward(x_bf, w_bf, b_pt, tile_b=128))
    ref3 = jax.nn.sigmoid(x_bf.astype(jnp.float32) @ w_bf.astype(jnp.float32).T
                          + b_pt)
    assert out3.dtype == jnp.bfloat16 and out3.shape == (batch2, 1)
    assert jnp.allclose(out3.astype(jnp.float32), ref3, atol=2e-2), \
        "mismatch vs reference (bf16 batch)"

    print("KERNEL_OK")
</pallas_src>

<mosaic_0001>
module attributes {stable_mosaic.version = 11 : i64} {
  func.func @_linreg_sigmoid_kernel(%arg0: i32, %arg1: memref<8x32xf32, #tpu.memory_space<vmem>>, %arg2: memref<32x1xf32, #tpu.memory_space<vmem>>, %arg3: memref<1x1xf32, #tpu.memory_space<smem>>, %arg4: memref<8x1xf32, #tpu.memory_space<vmem>>) attributes {dimension_semantics = [#tpu.dimension_semantics<parallel>], iteration_bounds = array<i64: 1>, scalar_prefetch = 0 : i64, scratch_operands = 0 : i64, tpu.core_type = #tpu.core_type<tc>, window_params = [{transform_indices = @transform_0, window_bounds = array<i64: 8, 32>}, {pipeline_mode = #tpu.pipeline_mode<synchronous>, transform_indices = @transform_1, window_bounds = array<i64: 32, 1>}, {transform_indices = @transform_2, window_bounds = array<i64: 1, 1>}, {transform_indices = @transform_3, window_bounds = array<i64: 8, 1>}]} {
    %c0 = arith.constant 0 : index
    %c0_0 = arith.constant 0 : index
    %0 = vector.load %arg1[%c0, %c0_0] : memref<8x32xf32, #tpu.memory_space<vmem>>, vector<8x32xf32>
    %c0_1 = arith.constant 0 : index
    %c0_2 = arith.constant 0 : index
    %1 = vector.load %arg2[%c0_1, %c0_2] : memref<32x1xf32, #tpu.memory_space<vmem>>, vector<32x1xf32>
    %cst = arith.constant dense<0.000000e+00> : vector<8x1xf32>
    %2 = tpu.matmul %0, %1, %cst {dimension_numbers = #tpu.dot_dimension_numbers<[1], [0], [0], [1], [0, 0, 1, 1], [], []>} : vector<8x32xf32>, vector<32x1xf32>, vector<8x1xf32> -> vector<8x1xf32>
    %c0_3 = arith.constant 0 : index
    %c0_4 = arith.constant 0 : index
    %3 = memref.load %arg3[%c0_3, %c0_4] : memref<1x1xf32, #tpu.memory_space<smem>>
    %4 = vector.broadcast %3 : f32 to vector<8x1xf32>
    %5 = arith.addf %2, %4 : vector<8x1xf32>
    %6 = arith.negf %5 : vector<8x1xf32>
    %7 = math.exp %6 : vector<8x1xf32>
    %cst_5 = arith.constant 1.000000e+00 : f32
    %8 = vector.broadcast %cst_5 : f32 to vector<8x1xf32>
    %9 = arith.addf %8, %7 : vector<8x1xf32>
    %10 = arith.divf %8, %9 : vector<8x1xf32>
    %c0_6 = arith.constant 0 : index
    %c0_7 = arith.constant 0 : index
    %11 = vector.load %arg4[%c0_6, %c0_7] : memref<8x1xf32, #tpu.memory_space<vmem>>, vector<8x1xf32>
    tpu.vector_store %arg4[%c0_6, %c0_7], %10 {strides = array<i32>} : memref<8x1xf32, #tpu.memory_space<vmem>>, vector<8x1xf32>,
    return
  }
  func.func @transform_0(%arg0: i32) -> (i32, i32) {
    %c0_i32 = arith.constant 0 : i32
    %c0_i32_0 = arith.constant 0 : i32
    return %arg0, %c0_i32 : i32, i32
  }
  func.func @transform_1(%arg0: i32) -> (i32, i32) {
    %c0_i32 = arith.constant 0 : i32
    %c0_i32_0 = arith.constant 0 : i32
    %c0_i32_1 = arith.constant 0 : i32
    return %c0_i32, %c0_i32_0 : i32, i32
  }
  func.func @transform_2(%arg0: i32) -> (i32, i32) {
    %c0_i32 = arith.constant 0 : i32
    %c0_i32_0 = arith.constant 0 : i32
    %c0_i32_1 = arith.constant 0 : i32
    return %c0_i32, %c0_i32_0 : i32, i32
  }
  func.func @transform_3(%arg0: i32) -> (i32, i32) {
    %c0_i32 = arith.constant 0 : i32
    %c0_i32_0 = arith.constant 0 : i32
    return %arg0, %c0_i32 : i32, i32
  }
}

</mosaic_0001>

<bundles_post_ra>
// kernel: tpu_custom_call.1
= control target key start
LH: loop header
LB: loop body
LE: loop exit
PB: predicated region body
PF: predicated region fallthrough
CT: control target
= control target key end

     0   :  { %v139_v0 = vmov 0.0|0.0   ;;  %vm140_vm0 = vmmov 0   ;;  %v141_v4 = vmov 0.0   ;;  %vm22_vm1 = vcmask 261120   ;;  %s183_s1 = inlined_call_operand.vmem [shape: f32[32,1], index: 1, kind: input, shape index: {}]   ;;  %s184_s0 = inlined_call_operand.vmem [shape: f32[8,32], index: 0, kind: input, shape index: {}]   ;;  %s185_s2 = inlined_call_operand.<no memory space> [shape: f32[1,1], index: 2, kind: input, shape index: {}]   ;;  %s186_s3 = inlined_call_operand.vmem [shape: f32[8,1], index: 3, kind: output, shape index: {}]  }
   0x1   :  { %126 = vmatprep.subr.bf16.mxu0 %v139_v0  ;;  %v16_v1 = vld [vmem:[%s183_s1] sm:$0xff]  ;;  %v17_v2 = vld [vmem:[%s183_s1 + $0x8] sm:$0xff]  ;;  %v18_v3 = vld [vmem:[%s183_s1 + $0x10] sm:$0xff]  ;;  %123 = vmatprep.mubr.msk.f32.mxu0 %vm140_vm0, %v141_v4  ;;  %v21_v9 = vstv %s185_s2  ;;  %vm102_vm2 = vcmask 7168  }
   0x2   :  { %v127_v5 = vpack.c.bf16 %v17_v2, %v16_v1  ;;  %v19_v6 = vld [vmem:[%s183_s1 + $0x18] sm:$0xff]  ;;  %v15_v8 = vld [vmem:[%s184_s0] sm:$0xff] }
   0x3   :  { %v130_v7 = vpack.c.bf16 %v19_v6, %v18_v3 }
   0x4   :  { %128 = vmatpush3.bf16.msra.mxu0 %v127_v5 }
   0x5   :  { %129 = vmatprep.subr.bf16.mxu0 %v139_v0 }
   0x8   :  { %131 = vmatpush3.bf16.msra.mxu0 %v130_v7 }
   0xb   :  { %124 = vmatmul.mubr.msk.f32.vlgmr.msra.gmra.mrb[0].mxu0 %vm22_vm1, %v15_v8 }
  0xde   :  { %v92_v10 = vpop.f32.mrb[0].mxu0 }
  0xdf   :  { %v93_v11 = vadd.f32 %v92_v10, %v21_v9  ;;  %v125_v12 = vpop.f32.mrb[1].mxu0 }
  0xe1   :  { %v109_v13 = vmul.f32 -1.442695, %v93_v11 }
  0xe3   :  { %135 = vpow2.f32 %v109_v13 }
  0xed   :  { %v136_v14 = vpop.eup %135 }
  0xee   :  { %v99_v15 = vadd.f32 1.0, %v136_v14 }
  0xf0   :  { %137 = vrcp.f32 %v99_v15 }
  0xfa   :  { %v138_v16 = vpop.eup %137 }
  0xfb   :  { %103 = vst.msk [vmem:[%s186_s3] sm:$0xff] %vm102_vm2, %v138_v16 }

</bundles_post_ra>
